<compile_context>
chip_gen: v7x
topology: tpu7x:2x2x1
jax: 0.10.0
libtpu: 0.0.40
codegen_flags: <defaults>
</compile_context>

<pallas_src>
import functools

import jax
import jax.numpy as jnp
from jax.experimental import pallas as pl
from jax.experimental.pallas import tpu as pltpu


def _round_up(x, m):
    return ((x + m - 1) // m) * m


# -----------------------------------------------------------------------------
# One-time parameter preparation (torch nn.Linear layout -> kernel layout).
# -----------------------------------------------------------------------------
def prepare_params(w1, b1, w2, b2, w3, b3, state_dim):
    """Prepare torch-layout Linear params for the Pallas kernel. Do this ONCE.

    Inputs (torch nn.Linear layout):
      w1: (100, Ds+Da)  b1: (100,) or (1, 100)
      w2: (100, 100)    b2: (100,) or (1, 100)
      w3: (Ds, 100)     b3: (Ds,)  or (1, Ds)

    Returns (w1s, w1a, b_packed, w2p, w3p):
      w1s: (Ds, 128)  w1a: (Da, 128)   -- W1^T split along input dim, hidden padded to 128
      b_packed: (3, 128)               -- rows = [b1, b2, b3] (b3 zero-padded past Ds)
      w2p: (128, 128)  w3p: (128, Ds)
    Padding the hidden width 100 -> 128 is exact: padded hidden units are
    relu(0) = 0 and multiply zero rows of the next weight matrix.
    """
    f32 = jnp.float32
    w1 = jnp.asarray(w1, f32).T          # (Ds+Da, H1)
    w2 = jnp.asarray(w2, f32).T          # (H1, H2)
    w3 = jnp.asarray(w3, f32).T          # (H2, Ds)
    b1 = jnp.asarray(b1, f32).reshape(-1)
    b2 = jnp.asarray(b2, f32).reshape(-1)
    b3 = jnp.asarray(b3, f32).reshape(-1)

    Ds = state_dim
    H1, H2 = w1.shape[1], w2.shape[1]
    assert w2.shape[0] == H1 and w3.shape[0] == H2
    assert b1.shape[0] == H1 and b2.shape[0] == H2 and b3.shape[0] == w3.shape[1]

    H1p, H2p = _round_up(H1, 128), _round_up(H2, 128)
    Lp = max(H1p, H2p, _round_up(b3.shape[0], 128))  # packed-bias lane width (128 here)

    w1s = jnp.pad(w1[:Ds], ((0, 0), (0, H1p - H1)))
    w1a = jnp.pad(w1[Ds:], ((0, 0), (0, H1p - H1)))
    w2p = jnp.pad(w2, ((0, H1p - H1), (0, H2p - H2)))
    w3p = jnp.pad(w3, ((0, H2p - H2), (0, 0)))
    b_packed = jnp.stack([
        jnp.pad(b1, (0, Lp - b1.shape[0])),
        jnp.pad(b2, (0, Lp - b2.shape[0])),
        jnp.pad(b3, (0, Lp - b3.shape[0])),
    ], axis=0)                                        # (3, Lp)
    return w1s, w1a, b_packed, w2p, w3p


# -----------------------------------------------------------------------------
# Kernel: one batch tile of the 3-layer MLP.
# -----------------------------------------------------------------------------
def _abs_dynamics_kernel(state_ref, action_ref,
                         w1s_ref, w1a_ref, b_ref,
                         w2_ref, w3_ref,
                         out_ref):
    Ds = out_ref.shape[-1]
    s = state_ref[...].astype(jnp.float32)    # (bb, Ds)
    a = action_ref[...].astype(jnp.float32)   # (bb, Da)
    b = b_ref[...]                            # (3, 128) f32

    # Layer 1: relu(concat([s, a]) @ W1 + b1) == relu(s @ W1_s + a @ W1_a + b1)
    h1 = (jnp.dot(s, w1s_ref[...], preferred_element_type=jnp.float32)
          + jnp.dot(a, w1a_ref[...], preferred_element_type=jnp.float32)
          + b[0:1, :])
    h1 = jnp.maximum(h1, 0.0)

    # Layer 2: relu(h1 @ W2 + b2)
    h2 = jnp.dot(h1, w2_ref[...], preferred_element_type=jnp.float32) + b[1:2, :]
    h2 = jnp.maximum(h2, 0.0)

    # Layer 3: h2 @ W3 + b3
    out = jnp.dot(h2, w3_ref[...], preferred_element_type=jnp.float32) + b[2:3, :Ds]
    out_ref[...] = out.astype(out_ref.dtype)


# -----------------------------------------------------------------------------
# Wrapper.
# -----------------------------------------------------------------------------
@functools.partial(jax.jit, static_argnames=("block_b",))
def absolute_dynamics_pallas(state, action, prepared_params, *, block_b=1024):
    """state: (..., Ds); action: (..., Da) -> next_state: (..., Ds).

    prepared_params = prepare_params(...) output (already padded / split / packed).
    """
    w1s, w1a, b_packed, w2, w3 = prepared_params
    Ds = state.shape[-1]
    Da = action.shape[-1]
    H1p = w1s.shape[1]
    H2p = w2.shape[1]
    batch_shape = state.shape[:-1]

    # Flatten arbitrary leading batch dims (matches torch's (..., dim) forward).
    s2 = state.reshape(-1, Ds)
    a2 = action.reshape(-1, Da)
    B = s2.shape[0]

    # ---- Batch tiling: large tile (overhead-bound kernel), sublane-aligned.
    bb = _round_up(min(block_b, _round_up(B, 8)), 8)
    # v7x megacore: keep >= 2 grid steps so both TensorCores get work when the
    # batch is large enough; harmless (just a smaller tile) on 1-TC v5e/v6e.
    if B >= 512 and _round_up(B, bb) // bb < 2:
        bb = _round_up((B + 1) // 2, 8)
    Bp = _round_up(B, bb)
    if Bp != B:
        s2 = jnp.pad(s2, ((0, Bp - B), (0, 0)))
        a2 = jnp.pad(a2, ((0, Bp - B), (0, 0)))

    grid = (Bp // bb,)

    def full_spec(arr):
        # Whole (tiny) weight/bias tensor, same block every grid step -> VMEM-resident.
        return pl.BlockSpec(arr.shape, lambda i: (0, 0))

    # Advisory cost for XLA scheduling around the custom call.
    weight_bytes = 4 * (Ds * H1p + Da * H1p + 3 * b_packed.shape[1]
                        + H1p * H2p + H2p * Ds)
    cost = pl.CostEstimate(
        flops=2 * Bp * ((Ds + Da) * H1p + H1p * H2p + H2p * Ds),
        transcendentals=0,
        bytes_accessed=4 * Bp * (Ds + Da + Ds) + weight_bytes,
    )

    out = pl.pallas_call(
        _abs_dynamics_kernel,
        out_shape=jax.ShapeDtypeStruct((Bp, Ds), state.dtype),
        grid=grid,
        in_specs=[
            pl.BlockSpec((bb, Ds), lambda i: (i, 0)),   # state tile
            pl.BlockSpec((bb, Da), lambda i: (i, 0)),   # action tile
            full_spec(w1s), full_spec(w1a), full_spec(b_packed),
            full_spec(w2), full_spec(w3),
        ],
        out_specs=pl.BlockSpec((bb, Ds), lambda i: (i, 0)),
        compiler_params=pltpu.CompilerParams(
            dimension_semantics=("parallel",)),
        cost_estimate=cost,
    )(s2, a2, w1s, w1a, b_packed, w2, w3)

    out = out[:B]
    return out.reshape(*batch_shape, Ds)


# -----------------------------------------------------------------------------
# Pure-JAX reference mirroring the PyTorch forward exactly (torch layout, concat).
# -----------------------------------------------------------------------------
def absolute_dynamics_ref(state, action, w1, b1, w2, b2, w3, b3):
    hp = jax.lax.Precision.HIGHEST
    x = jnp.concatenate([state, action], axis=-1)
    h1 = jnp.maximum(jnp.dot(x, w1.T, precision=hp) + b1, 0.0)
    h2 = jnp.maximum(jnp.dot(h1, w2.T, precision=hp) + b2, 0.0)
    return jnp.dot(h2, w3.T, precision=hp) + b3


if __name__ == "__main__":
    # Small shapes consistent with the module: hidden width 100 is fixed by it.
    Ds, Da, H = 4, 4, 100

    key = jax.random.PRNGKey(0)
    ks = jax.random.split(key, 10)

    # Torch nn.Linear layout: W is (out_features, in_features), bias is 1-D.
    w1 = 0.2 * jax.random.normal(ks[2], (H, Ds + Da), dtype=jnp.float32)
    b1 = 0.1 * jax.random.normal(ks[3], (H,), dtype=jnp.float32)
    w2 = 0.2 * jax.random.normal(ks[4], (H, H), dtype=jnp.float32)
    b2 = 0.1 * jax.random.normal(ks[5], (H,), dtype=jnp.float32)
    w3 = 0.2 * jax.random.normal(ks[6], (Ds, H), dtype=jnp.float32)
    b3 = 0.1 * jax.random.normal(ks[7], (Ds,), dtype=jnp.float32)

    # One-time prep (split W1, pad hidden 100->128, pack biases).
    prepared = prepare_params(w1, b1, w2, b2, w3, b3, state_dim=Ds)

    # --- Small batch (grid of 1 tile).
    B = 8
    state = jax.random.normal(ks[0], (B, Ds), dtype=jnp.float32)
    action = jax.random.normal(ks[1], (B, Da), dtype=jnp.float32)
    next_state = absolute_dynamics_pallas(state, action, prepared)
    jax.block_until_ready(next_state)
    ref = absolute_dynamics_ref(state, action, w1, b1, w2, b2, w3, b3)
    assert next_state.shape == (B, Ds), next_state.shape
    assert jnp.allclose(next_state, ref, rtol=1e-4, atol=1e-4)

    # --- Ragged batch with extra leading dims, small tile -> multi-step grid
    #     (exercises batch padding and the "parallel" grid axis).
    B2 = 300
    state2 = jax.random.normal(ks[8], (3, B2, Ds), dtype=jnp.float32)
    action2 = jax.random.normal(ks[9], (3, B2, Da), dtype=jnp.float32)
    next_state2 = absolute_dynamics_pallas(state2, action2, prepared, block_b=64)
    jax.block_until_ready(next_state2)
    ref2 = absolute_dynamics_ref(state2, action2, w1, b1, w2, b2, w3, b3)
    assert next_state2.shape == (3, B2, Ds), next_state2.shape
    assert jnp.allclose(next_state2, ref2, rtol=1e-4, atol=1e-4)

    print("KERNEL_OK")
</pallas_src>

<mosaic_0001>
module attributes {stable_mosaic.version = 11 : i64} {
  func.func @_abs_dynamics_kernel(%arg0: i32, %arg1: memref<8x4xf32, #tpu.memory_space<vmem>>, %arg2: memref<8x4xf32, #tpu.memory_space<vmem>>, %arg3: memref<4x128xf32, #tpu.memory_space<vmem>>, %arg4: memref<4x128xf32, #tpu.memory_space<vmem>>, %arg5: memref<3x128xf32, #tpu.memory_space<vmem>>, %arg6: memref<128x128xf32, #tpu.memory_space<vmem>>, %arg7: memref<128x4xf32, #tpu.memory_space<vmem>>, %arg8: memref<8x4xf32, #tpu.memory_space<vmem>>) attributes {dimension_semantics = [#tpu.dimension_semantics<parallel>], iteration_bounds = array<i64: 1>, scalar_prefetch = 0 : i64, scratch_operands = 0 : i64, tpu.core_type = #tpu.core_type<tc>, window_params = [{transform_indices = @transform_0, window_bounds = array<i64: 8, 4>}, {transform_indices = @transform_1, window_bounds = array<i64: 8, 4>}, {pipeline_mode = #tpu.pipeline_mode<synchronous>, transform_indices = @transform_2, window_bounds = array<i64: 4, 128>}, {pipeline_mode = #tpu.pipeline_mode<synchronous>, transform_indices = @transform_3, window_bounds = array<i64: 4, 128>}, {pipeline_mode = #tpu.pipeline_mode<synchronous>, transform_indices = @transform_4, window_bounds = array<i64: 3, 128>}, {pipeline_mode = #tpu.pipeline_mode<synchronous>, transform_indices = @transform_5, window_bounds = array<i64: 128, 128>}, {pipeline_mode = #tpu.pipeline_mode<synchronous>, transform_indices = @transform_6, window_bounds = array<i64: 128, 4>}, {transform_indices = @transform_7, window_bounds = array<i64: 8, 4>}]} {
    %c0 = arith.constant 0 : index
    %c0_0 = arith.constant 0 : index
    %0 = vector.load %arg1[%c0, %c0_0] : memref<8x4xf32, #tpu.memory_space<vmem>>, vector<8x4xf32>
    %c0_1 = arith.constant 0 : index
    %c0_2 = arith.constant 0 : index
    %1 = vector.load %arg2[%c0_1, %c0_2] : memref<8x4xf32, #tpu.memory_space<vmem>>, vector<8x4xf32>
    %c0_3 = arith.constant 0 : index
    %c0_4 = arith.constant 0 : index
    %2 = vector.load %arg5[%c0_3, %c0_4] : memref<3x128xf32, #tpu.memory_space<vmem>>, vector<3x128xf32>
    %c0_5 = arith.constant 0 : index
    %c0_6 = arith.constant 0 : index
    %3 = vector.load %arg3[%c0_5, %c0_6] : memref<4x128xf32, #tpu.memory_space<vmem>>, vector<4x128xf32>
    %cst = arith.constant dense<0.000000e+00> : vector<8x128xf32>
    %4 = tpu.matmul %0, %3, %cst {dimension_numbers = #tpu.dot_dimension_numbers<[1], [0], [0], [1], [0, 0, 1, 1], [], []>} : vector<8x4xf32>, vector<4x128xf32>, vector<8x128xf32> -> vector<8x128xf32>
    %c0_7 = arith.constant 0 : index
    %c0_8 = arith.constant 0 : index
    %5 = vector.load %arg4[%c0_7, %c0_8] : memref<4x128xf32, #tpu.memory_space<vmem>>, vector<4x128xf32>
    %cst_9 = arith.constant dense<0.000000e+00> : vector<8x128xf32>
    %6 = tpu.matmul %1, %5, %cst_9 {dimension_numbers = #tpu.dot_dimension_numbers<[1], [0], [0], [1], [0, 0, 1, 1], [], []>} : vector<8x4xf32>, vector<4x128xf32>, vector<8x128xf32> -> vector<8x128xf32>
    %7 = arith.addf %4, %6 : vector<8x128xf32>
    %8 = vector.extract_strided_slice %2 {offsets = [0, 0], sizes = [1, 128], strides = [1, 1]} : vector<3x128xf32> to vector<1x128xf32>
    %9 = vector.broadcast %8 : vector<1x128xf32> to vector<8x128xf32>
    %10 = arith.addf %7, %9 : vector<8x128xf32>
    %cst_10 = arith.constant 0.000000e+00 : f32
    %11 = vector.broadcast %cst_10 : f32 to vector<8x128xf32>
    %12 = arith.maximumf %10, %11 : vector<8x128xf32>
    %c0_11 = arith.constant 0 : index
    %c0_12 = arith.constant 0 : index
    %13 = vector.load %arg6[%c0_11, %c0_12] : memref<128x128xf32, #tpu.memory_space<vmem>>, vector<128x128xf32>
    %cst_13 = arith.constant dense<0.000000e+00> : vector<8x128xf32>
    %14 = tpu.matmul %12, %13, %cst_13 {dimension_numbers = #tpu.dot_dimension_numbers<[1], [0], [0], [1], [0, 0, 1, 1], [], []>} : vector<8x128xf32>, vector<128x128xf32>, vector<8x128xf32> -> vector<8x128xf32>
    %15 = vector.extract_strided_slice %2 {offsets = [1, 0], sizes = [1, 128], strides = [1, 1]} : vector<3x128xf32> to vector<1x128xf32>
    %16 = vector.broadcast %15 : vector<1x128xf32> to vector<8x128xf32>
    %17 = arith.addf %14, %16 : vector<8x128xf32>
    %cst_14 = arith.constant 0.000000e+00 : f32
    %18 = vector.broadcast %cst_14 : f32 to vector<8x128xf32>
    %19 = arith.maximumf %17, %18 : vector<8x128xf32>
    %c0_15 = arith.constant 0 : index
    %c0_16 = arith.constant 0 : index
    %20 = vector.load %arg7[%c0_15, %c0_16] : memref<128x4xf32, #tpu.memory_space<vmem>>, vector<128x4xf32>
    %cst_17 = arith.constant dense<0.000000e+00> : vector<8x4xf32>
    %21 = tpu.matmul %19, %20, %cst_17 {dimension_numbers = #tpu.dot_dimension_numbers<[1], [0], [0], [1], [0, 0, 1, 1], [], []>} : vector<8x128xf32>, vector<128x4xf32>, vector<8x4xf32> -> vector<8x4xf32>
    %22 = vector.extract_strided_slice %2 {offsets = [2, 0], sizes = [1, 4], strides = [1, 1]} : vector<3x128xf32> to vector<1x4xf32>
    %23 = vector.broadcast %22 : vector<1x4xf32> to vector<8x4xf32>
    %24 = arith.addf %21, %23 : vector<8x4xf32>
    %c0_18 = arith.constant 0 : index
    %c0_19 = arith.constant 0 : index
    %25 = vector.load %arg8[%c0_18, %c0_19] : memref<8x4xf32, #tpu.memory_space<vmem>>, vector<8x4xf32>
    tpu.vector_store %arg8[%c0_18, %c0_19], %24 {strides = array<i32>} : memref<8x4xf32, #tpu.memory_space<vmem>>, vector<8x4xf32>,
    return
  }
  func.func @transform_0(%arg0: i32) -> (i32, i32) {
    %c0_i32 = arith.constant 0 : i32
    %c0_i32_0 = arith.constant 0 : i32
    return %arg0, %c0_i32 : i32, i32
  }
  func.func @transform_1(%arg0: i32) -> (i32, i32) {
    %c0_i32 = arith.constant 0 : i32
    %c0_i32_0 = arith.constant 0 : i32
    return %arg0, %c0_i32 : i32, i32
  }
  func.func @transform_2(%arg0: i32) -> (i32, i32) {
    %c0_i32 = arith.constant 0 : i32
    %c0_i32_0 = arith.constant 0 : i32
    %c0_i32_1 = arith.constant 0 : i32
    return %c0_i32, %c0_i32_0 : i32, i32
  }
  func.func @transform_3(%arg0: i32) -> (i32, i32) {
    %c0_i32 = arith.constant 0 : i32
    %c0_i32_0 = arith.constant 0 : i32
    %c0_i32_1 = arith.constant 0 : i32
    return %c0_i32, %c0_i32_0 : i32, i32
  }
  func.func @transform_4(%arg0: i32) -> (i32, i32) {
    %c0_i32 = arith.constant 0 : i32
    %c0_i32_0 = arith.constant 0 : i32
    %c0_i32_1 = arith.constant 0 : i32
    return %c0_i32, %c0_i32_0 : i32, i32
  }
  func.func @transform_5(%arg0: i32) -> (i32, i32) {
    %c0_i32 = arith.constant 0 : i32
    %c0_i32_0 = arith.constant 0 : i32
    %c0_i32_1 = arith.constant 0 : i32
    return %c0_i32, %c0_i32_0 : i32, i32
  }
  func.func @transform_6(%arg0: i32) -> (i32, i32) {
    %c0_i32 = arith.constant 0 : i32
    %c0_i32_0 = arith.constant 0 : i32
    %c0_i32_1 = arith.constant 0 : i32
    return %c0_i32, %c0_i32_0 : i32, i32
  }
  func.func @transform_7(%arg0: i32) -> (i32, i32) {
    %c0_i32 = arith.constant 0 : i32
    %c0_i32_0 = arith.constant 0 : i32
    return %arg0, %c0_i32 : i32, i32
  }
}

</mosaic_0001>

<bundles_post_ra>
// kernel: absolute_dynamics_pallas.1
= control target key start
LH: loop header
LB: loop body
LE: loop exit
PB: predicated region body
PF: predicated region fallthrough
CT: control target
= control target key end

     0   :  { %vm35_vm0 = vcmask 1043456   ;;  %v550_v0 = vmov 0.0   ;;  %vm31_vm1 = vcmask 31744   ;;  %vm551_vm2 = vmmov 0   ;;  %s732_s3 = inlined_call_operand.vmem [shape: f32[4,128], index: 3, kind: input, shape index: {}]   ;;  %s733_s2 = inlined_call_operand.vmem [shape: f32[4,128], index: 2, kind: input, shape index: {}]   ;;  %s734_s1 = inlined_call_operand.vmem [shape: f32[8,4], index: 1, kind: input, shape index: {}]   ;;  %s735_s0 = inlined_call_operand.vmem [shape: f32[8,4], index: 0, kind: input, shape index: {}]   ;;  %s736_s5 = inlined_call_operand.vmem [shape: f32[128,128], index: 5, kind: input, shape index: {}]   ;;  %s737_s6 = inlined_call_operand.vmem [shape: f32[128,4], index: 6, kind: input, shape index: {}]   ;;  %s738_s4 = inlined_call_operand.vmem [shape: f32[3,128], index: 4, kind: input, shape index: {}]   ;;  %s739_s7 = inlined_call_operand.vmem [shape: f32[8,4], index: 7, kind: output, shape index: {}]  }
   0x1   :  { %419 = vmatprep.subr.mxu0 %v550_v0  ;;  %424 = vmatprep.subr.mxu1 %v550_v0  ;;  %v30_v1 = vld [vmem:[%s732_s3] sm:$0xf]  ;;  %v192_v6 = vld [vmem:[%s736_s5 + $0x8] sm:$0xff]  ;;  %v193_v8 = vld [vmem:[%s736_s5 + $0x10] sm:$0xff]  ;;  %v552_v10 = vmov 0.0|0.0   ;;  %v185_v51 = vlaneseq }
   0x2   :  { %v29_v2 = vld [vmem:[%s733_s2] sm:$0xf]  ;;  %420 = vmatpush3.msk.msra.mxu0 %vm35_vm0, %v30_v1  ;;  %421 = vmatprep.mubr.msk.f32.mxu0 %vm551_vm2, %v550_v0  ;;  %v194_v9 = vld [vmem:[%s736_s5 + $0x18] sm:$0xff]  ;;  %v196_v13 = vld [vmem:[%s736_s5 + $0x28] sm:$0xff] }
   0x3   :  { %v27_v3 = vld [vmem:[%s734_s1] sm:$0xff]  ;;  %425 = vmatpush3.msk.msra.mxu1 %vm35_vm0, %v29_v2  ;;  %426 = vmatprep.mubr.msk.f32.mxu1 %vm551_vm2, %v550_v0  ;;  %v503_v11 = vpack.c.bf16 %v194_v9, %v193_v8  ;;  %v197_v15 = vld [vmem:[%s736_s5 + $0x30] sm:$0xff]  ;;  %v198_v16 = vld [vmem:[%s736_s5 + $0x38] sm:$0xff]  ;;  %v186_v52 = vshrl.u32 %v185_v51, 7 }
   0x4   :  { %v26_v4 = vld [vmem:[%s735_s0] sm:$0xff]  ;;  %422 = vmatmul.mubr.msk.f32.vlgmr.msra.gmra.mrb[0].mxu0 %vm31_vm1, %v27_v3  ;;  %499 = vmatprep.subr.bf16.mxu0 %v552_v10  ;;  %v509_v17 = vpack.c.bf16 %v198_v16, %v197_v15  ;;  %v200_v19 = vld [vmem:[%s736_s5 + $0x48] sm:$0xff]  ;;  %v201_v21 = vld [vmem:[%s736_s5 + $0x50] sm:$0xff] }
   0x5   :  { %v191_v5 = vld [vmem:[%s736_s5] sm:$0xff]  ;;  %427 = vmatmul.mubr.msk.f32.vlgmr.msra.gmra.mrb[0].mxu1 %vm31_vm1, %v26_v4  ;;  %461 = vmatprep.mubr.msk.f32.mxu0 %vm551_vm2, %v550_v0  ;;  %v202_v22 = vld [vmem:[%s736_s5 + $0x58] sm:$0xff]  ;;  %v204_v25 = vld [vmem:[%s736_s5 + $0x68] sm:$0xff]  ;;  %v187_v53 = vsub.s32 0, %v186_v52  ;;  %v209_v2 = vsub.s32 1, %v186_v52  ;;  %v300_v8 = vsub.s32 2, %v186_v52 }
   0x6   :  { %v500_v7 = vpack.c.bf16 %v192_v6, %v191_v5  ;;  %523 = vmatprep.subr.bf16.mxu1 %v552_v10  ;;  %v195_v12 = vld [vmem:[%s736_s5 + $0x20] sm:$0xff]  ;;  %496 = vmatprep.mubr.msk.f32.mxu1 %vm551_vm2, %v550_v0  ;;  %v515_v23 = vpack.c.bf16 %v202_v22, %v201_v21  ;;  %v205_v27 = vld [vmem:[%s736_s5 + $0x70] sm:$0xff]  ;;  %v206_v28 = vld [vmem:[%s736_s5 + $0x78] sm:$0xff] }
   0x7   :  { %v506_v14 = vpack.c.bf16 %v196_v13, %v195_v12  ;;  %v199_v18 = vld [vmem:[%s736_s5 + $0x40] sm:$0xff]  ;;  %v521_v29 = vpack.c.bf16 %v206_v28, %v205_v27  ;;  %v283_v31 = vld [vmem:[%s737_s6 + $0x8] sm:$0xff]  ;;  %v284_v32 = vld [vmem:[%s737_s6 + $0x10] sm:$0xff] }
   0x8   :  { %501 = vmatpush3.bf16.msra.mxu0 %v500_v7  ;;  %v512_v20 = vpack.c.bf16 %v200_v19, %v199_v18  ;;  %v203_v24 = vld [vmem:[%s736_s5 + $0x60] sm:$0xff]  ;;  %v285_v34 = vld [vmem:[%s737_s6 + $0x18] sm:$0xff]  ;;  %v287_v37 = vld [vmem:[%s737_s6 + $0x28] sm:$0xff] }
   0x9   :  { %502 = vmatprep.subr.bf16.mxu0 %v552_v10  ;;  %v518_v26 = vpack.c.bf16 %v204_v25, %v203_v24  ;;  %v282_v30 = vld [vmem:[%s737_s6] sm:$0xff]  ;;  %v527_v35 = vpack.c.bf16 %v285_v34, %v284_v32  ;;  %v288_v39 = vld [vmem:[%s737_s6 + $0x30] sm:$0xff]  ;;  %v289_v40 = vld [vmem:[%s737_s6 + $0x38] sm:$0xff] }
   0xa   :  { %v524_v33 = vpack.c.bf16 %v283_v31, %v282_v30  ;;  %v286_v36 = vld [vmem:[%s737_s6 + $0x20] sm:$0xff]  ;;  %v533_v41 = vpack.c.bf16 %v289_v40, %v288_v39  ;;  %v291_v43 = vld [vmem:[%s737_s6 + $0x48] sm:$0xff]  ;;  %v292_v45 = vld [vmem:[%s737_s6 + $0x50] sm:$0xff] }
   0xb   :  { %v530_v38 = vpack.c.bf16 %v287_v37, %v286_v36  ;;  %v290_v42 = vld [vmem:[%s737_s6 + $0x40] sm:$0xff]  ;;  %v293_v46 = vld [vmem:[%s737_s6 + $0x58] sm:$0xff]  ;;  %v295_v49 = vld [vmem:[%s737_s6 + $0x68] sm:$0xff] }
   0xc   :  { %504 = vmatpush3.bf16.msra.mxu0 %v503_v11  ;;  %525 = vmatpush3.bf16.msra.mxu1 %v524_v33  ;;  %v536_v44 = vpack.c.bf16 %v291_v43, %v290_v42  ;;  %v539_v47 = vpack.c.bf16 %v293_v46, %v292_v45  ;;  %v294_v48 = vld [vmem:[%s737_s6 + $0x60] sm:$0xff]  ;;  %v296_v63 = vld [vmem:[%s737_s6 + $0x70] sm:$0xff]  ;;  %v297_v0 = vld [vmem:[%s737_s6 + $0x78] sm:$0xff] }
   0xd   :  { %505 = vmatprep.subr.bf16.mxu0 %v552_v10  ;;  %526 = vmatprep.subr.bf16.mxu1 %v552_v10  ;;  %v542_v50 = vpack.c.bf16 %v295_v49, %v294_v48  ;;  %v28_v54 = vld [vmem:[%s738_s4] sm:$0x7]  ;;  %v545_v1 = vpack.c.bf16 %v297_v0, %v296_v63 }
   0xe   :  { %v188_v55 = vrot.slane %v28_v54, %v187_v53  ;;  %v210_v3 = vrot.slane %v28_v54, %v209_v2  ;;  %v301_v9 = vrot.slane %v28_v54, %v300_v8 }
  0x10   :  { %507 = vmatpush3.bf16.msra.mxu0 %v506_v14  ;;  %528 = vmatpush3.bf16.msra.mxu1 %v527_v35 }
  0x11   :  { %508 = vmatprep.subr.bf16.mxu0 %v552_v10  ;;  %529 = vmatprep.subr.bf16.mxu1 %v552_v10 }
  0x14   :  { %510 = vmatpush3.bf16.msra.mxu0 %v509_v17  ;;  %531 = vmatpush3.bf16.msra.mxu1 %v530_v38 }
  0x15   :  { %511 = vmatprep.subr.bf16.mxu0 %v552_v10  ;;  %532 = vmatprep.subr.bf16.mxu1 %v552_v10 }
  0x18   :  { %513 = vmatpush3.bf16.msra.mxu0 %v512_v20  ;;  %534 = vmatpush3.bf16.msra.mxu1 %v533_v41 }
  0x19   :  { %514 = vmatprep.subr.bf16.mxu0 %v552_v10  ;;  %535 = vmatprep.subr.bf16.mxu1 %v552_v10 }
  0x1c   :  { %516 = vmatpush3.bf16.msra.mxu0 %v515_v23  ;;  %537 = vmatpush3.bf16.msra.mxu1 %v536_v44 }
  0x1d   :  { %517 = vmatprep.subr.bf16.mxu0 %v552_v10  ;;  %538 = vmatprep.subr.bf16.mxu1 %v552_v10 }
  0x20   :  { %519 = vmatpush3.bf16.msra.mxu0 %v518_v26  ;;  %540 = vmatpush3.bf16.msra.mxu1 %v539_v47 }
  0x21   :  { %520 = vmatprep.subr.bf16.mxu0 %v552_v10  ;;  %541 = vmatprep.subr.bf16.mxu1 %v552_v10 }
  0x24   :  { %522 = vmatpush3.bf16.msra.mxu0 %v521_v29  ;;  %543 = vmatpush3.bf16.msra.mxu1 %v542_v50 }
  0x25   :  { %544 = vmatprep.subr.bf16.mxu1 %v552_v10 }
  0x28   :  { %546 = vmatpush3.bf16.msra.mxu1 %v545_v1 }
  0xd7   :  { %v105_v56 = vpop.f32.mrb[0].mxu0 }
  0xd8   :  { %v181_v57 = vpop.f32.mrb[0].mxu1  ;;  %v423_v59 = vpop.f32.mrb[1].mxu0 }
  0xd9   :  { %v182_v58 = vadd.f32 %v181_v57, %v105_v56  ;;  %v428_v60 = vpop.f32.mrb[1].mxu1 }
  0xdb   :  { %v189_v61 = vadd.f32 %v188_v55, %v182_v58 }
  0xdd   :  { %v190_v62 = vmax.f32 %v189_v61, 0.0 }
  0xdf   :  { %462 = vmatmul.mubr.f32.vlgmr.msra.gmra.mrb[2].mxu0 %v190_v62 }
 0x1b2   :  { %v277_v4 = vpop.f32.mrb[2].mxu0 }
 0x1b3   :  { %v278_v5 = vadd.f32 %v277_v4, %v210_v3  ;;  %v463_v6 = vpop.f32.mrb[3].mxu0 }
 0x1b5   :  { %v281_v7 = vmax.f32 %v278_v5, 0.0 }
 0x1b7   :  { %497 = vmatmul.mubr.f32.vlgmr.msra.gmra.mrb[2].mxu1 %v281_v7 }
 0x28a   :  { %v368_v10 = vpop.f32.mrb[2].mxu1 }
 0x28b   :  { %v369_v11 = vadd.f32 %v368_v10, %v301_v9  ;;  %v498_v12 = vpop.f32.mrb[3].mxu1 }
 0x28d   :  { %372 = vst.msk [vmem:[%s739_s7] sm:$0xff] %vm31_vm1, %v369_v11 }

</bundles_post_ra>
